<compile_context>
chip_gen: v5e
topology: v5e:2x2
jax: 0.10.0
libtpu: 0.0.40
codegen_flags: <defaults>
</compile_context>

<pallas_src>
import functools

import jax
import jax.numpy as jnp
from jax.experimental import pallas as pl
from jax.experimental.pallas import tpu as pltpu


def _mlp_base_kernel(x_ref, w_ref, aux_ref, val_ref, actor_ref, *, ni, hidden_size):
    H = hidden_size
    x = x_ref[...]

    # Static, sublane-aligned slices of the fused weight / aux slabs.
    w1 = w_ref[:ni, :]          # (ni_pad, 2H)  layer 1, [actor | critic] lanes
    w2 = w_ref[ni:, :]          # (2H, 2H)      layer 2, block-diagonal
    b1 = aux_ref[0:1, :]        # (1, 2H)
    b2 = aux_ref[1:2, :]        # (1, 2H)
    wv = aux_ref[2:3, :]        # (1, 2H)  zero over actor lanes
    bv = aux_ref[3:4, 0:1]      # (1, 1)

    hp = jax.lax.Precision.HIGHEST
    # ---- fused layer 1: both trunks in one 128-lane MXU pass ----
    h1 = jnp.tanh(jnp.dot(x, w1, preferred_element_type=jnp.float32, precision=hp) + b1)
    # ---- fused layer 2: block-diagonal keeps trunks independent ----
    h2 = jnp.tanh(jnp.dot(h1, w2, preferred_element_type=jnp.float32, precision=hp) + b2)

    # Actor half is lanes [0:H]: zero-shift prefix slice, stored directly.
    actor_ref[...] = h2[:, :H]
    # Value head on VPU + XLU; critic half never written to HBM.
    val_ref[...] = jnp.sum(h2 * wv, axis=-1, keepdims=True) + bv


def mlp_base_forward(x, packed, hidden_size, masks=None):
    """x: (B, num_inputs) f32. packed: dict from pack_params (built once at init).
    Returns (value (B,1), hidden_actor (B,H))."""
    del masks  # unused, matching the reference module
    B, NI = x.shape
    H = hidden_size
    ni_pad = packed["ni_pad"]
    if NI != ni_pad:  # no-op at trace time when num_inputs is already 8-aligned
        x = jnp.pad(x, ((0, 0), (0, ni_pad - NI)))

    kernel = functools.partial(_mlp_base_kernel, ni=ni_pad, hidden_size=H)
    full = lambda a: pl.BlockSpec(a.shape, lambda: (0,) * a.ndim)

    # Single program: whole working set is ~100 KiB of VMEM.
    # TODO(synk): for large batches, tile B over a "parallel" grid axis
    # (TILE_B >= 512 on v6e, 2 TensorCores on v7x) with constant weight-block
    # index_maps, and re-derive vmem_limit_bytes for the tiled buffers.
    value, hidden_actor = pl.pallas_call(
        kernel,
        out_shape=(
            jax.ShapeDtypeStruct((B, 1), jnp.float32),   # value, exact shape
            jax.ShapeDtypeStruct((B, H), jnp.float32),   # hidden_actor, exact shape
        ),
        grid=(),
        in_specs=[full(x), full(packed["w"]), full(packed["aux"])],
        out_specs=(
            pl.BlockSpec((B, 1), lambda: (0, 0)),
            pl.BlockSpec((B, H), lambda: (0, 0)),
        ),
        compiler_params=pltpu.CompilerParams(vmem_limit_bytes=2 << 20),
    )(x, packed["w"], packed["aux"])
    return value, hidden_actor


def pack_params(p, num_inputs, hidden_size):
    """Pack per-trunk weights into two fused operands. Call ONCE at init."""
    H = hidden_size
    H2 = 2 * H
    ni_pad = ((num_inputs + 7) // 8) * 8  # sublane-align the W1/W2 boundary

    # Layer 1: [actor | critic] along lanes, rows zero-padded to ni_pad.
    w1 = jnp.zeros((ni_pad, H2), jnp.float32)
    w1 = w1.at[:num_inputs, :H].set(p["wa1"]).at[:num_inputs, H:].set(p["wc1"])
    # Layer 2: block-diagonal so the two trunks stay mathematically independent.
    w2 = jnp.zeros((H2, H2), jnp.float32)
    w2 = w2.at[:H, :H].set(p["wa2"]).at[H:, H:].set(p["wc2"])
    w = jnp.concatenate([w1, w2], axis=0)                 # (ni_pad + 2H, 2H)

    aux = jnp.zeros((8, H2), jnp.float32)
    aux = aux.at[0, :H].set(p["ba1"][0]).at[0, H:].set(p["bc1"][0])   # b1
    aux = aux.at[1, :H].set(p["ba2"][0]).at[1, H:].set(p["bc2"][0])   # b2
    aux = aux.at[2, H:].set(p["wv"][:, 0])                            # wv on critic lanes
    aux = aux.at[3, 0].set(p["bv"][0, 0])                             # bv scalar
    return {"w": w, "aux": aux, "ni_pad": ni_pad}


def _init_normc(key, out_features, in_features):
    """PyTorch init_normc_: N(0,1) then normalize each output row's fan-in.
    Returned already transposed to (in_features, out_features) for x @ W."""
    w = jax.random.normal(key, (out_features, in_features), jnp.float32)
    w = w / jnp.sqrt(jnp.sum(w * w, axis=1, keepdims=True))
    return w.T


def make_params(key, num_inputs, hidden_size):
    ks = jax.random.split(key, 5)
    return {
        # actor
        "wa1": _init_normc(ks[0], hidden_size, num_inputs),
        "ba1": jnp.zeros((1, hidden_size), jnp.float32),
        "wa2": _init_normc(ks[1], hidden_size, hidden_size),
        "ba2": jnp.zeros((1, hidden_size), jnp.float32),
        # critic
        "wc1": _init_normc(ks[2], hidden_size, num_inputs),
        "bc1": jnp.zeros((1, hidden_size), jnp.float32),
        "wc2": _init_normc(ks[3], hidden_size, hidden_size),
        "bc2": jnp.zeros((1, hidden_size), jnp.float32),
        # critic_linear
        "wv": _init_normc(ks[4], 1, hidden_size),
        "bv": jnp.zeros((1, 1), jnp.float32),
    }


def _reference_forward(x, p):
    hc = jnp.tanh(jnp.tanh(x @ p["wc1"] + p["bc1"]) @ p["wc2"] + p["bc2"])
    ha = jnp.tanh(jnp.tanh(x @ p["wa1"] + p["ba1"]) @ p["wa2"] + p["ba2"])
    return hc @ p["wv"] + p["bv"], ha


if __name__ == "__main__":
    key = jax.random.PRNGKey(0)
    k_x, k_p = jax.random.split(key)

    batch, num_inputs, hidden_size = 8, 32, 64
    x = jax.random.normal(k_x, (batch, num_inputs), jnp.float32)
    masks = jnp.ones((batch, 1), jnp.float32)  # unused, kept for API parity
    params = make_params(k_p, num_inputs, hidden_size)
    packed = pack_params(params, num_inputs, hidden_size)  # once at init

    value, hidden_actor = mlp_base_forward(x, packed, hidden_size, masks)
    value = jax.block_until_ready(value)
    hidden_actor = jax.block_until_ready(hidden_actor)

    ref_value, ref_actor = _reference_forward(x, params)
    assert value.shape == (batch, 1)
    assert hidden_actor.shape == (batch, hidden_size)
    assert jnp.allclose(value, ref_value, atol=1e-5, rtol=1e-5)
    assert jnp.allclose(hidden_actor, ref_actor, atol=1e-5, rtol=1e-5)

    print("KERNEL_OK")
</pallas_src>

<mosaic_0001>
module attributes {stable_mosaic.version = 11 : i64} {
  func.func @_mlp_base_kernel(%arg0: memref<8x32xf32, #tpu.memory_space<vmem>>, %arg1: memref<160x128xf32, #tpu.memory_space<vmem>>, %arg2: memref<8x128xf32, #tpu.memory_space<vmem>>, %arg3: memref<8x1xf32, #tpu.memory_space<vmem>>, %arg4: memref<8x64xf32, #tpu.memory_space<vmem>>) attributes {dimension_semantics = [], scalar_prefetch = 0 : i64, scratch_operands = 0 : i64, tpu.core_type = #tpu.core_type<tc>} {
    %c0 = arith.constant 0 : index
    %c0_0 = arith.constant 0 : index
    %0 = vector.load %arg0[%c0, %c0_0] : memref<8x32xf32, #tpu.memory_space<vmem>>, vector<8x32xf32>
    %c0_1 = arith.constant 0 : index
    %c0_2 = arith.constant 0 : index
    %1 = vector.load %arg1[%c0_1, %c0_2] : memref<160x128xf32, #tpu.memory_space<vmem>>, vector<32x128xf32>
    %c32 = arith.constant 32 : index
    %c0_3 = arith.constant 0 : index
    %2 = vector.load %arg1[%c32, %c0_3] : memref<160x128xf32, #tpu.memory_space<vmem>>, vector<128x128xf32>
    %c0_4 = arith.constant 0 : index
    %c0_5 = arith.constant 0 : index
    %3 = vector.load %arg2[%c0_4, %c0_5] : memref<8x128xf32, #tpu.memory_space<vmem>>, vector<1x128xf32>
    %c1 = arith.constant 1 : index
    %c0_6 = arith.constant 0 : index
    %4 = vector.load %arg2[%c1, %c0_6] : memref<8x128xf32, #tpu.memory_space<vmem>>, vector<1x128xf32>
    %c2 = arith.constant 2 : index
    %c0_7 = arith.constant 0 : index
    %5 = vector.load %arg2[%c2, %c0_7] : memref<8x128xf32, #tpu.memory_space<vmem>>, vector<1x128xf32>
    %c3 = arith.constant 3 : index
    %c0_8 = arith.constant 0 : index
    %6 = vector.load %arg2[%c3, %c0_8] : memref<8x128xf32, #tpu.memory_space<vmem>>, vector<1x1xf32>
    %cst = arith.constant dense<0.000000e+00> : vector<8x128xf32>
    %7 = tpu.matmul %0, %1, %cst {dimension_numbers = #tpu.dot_dimension_numbers<[1], [0], [0], [1], [0, 0, 1, 1], [], []>, precision = #tpu.contract_precision<fp32>} : vector<8x32xf32>, vector<32x128xf32>, vector<8x128xf32> -> vector<8x128xf32>
    %8 = vector.broadcast %3 : vector<1x128xf32> to vector<8x128xf32>
    %9 = arith.addf %7, %8 : vector<8x128xf32>
    %10 = math.tanh %9 : vector<8x128xf32>
    %cst_9 = arith.constant dense<0.000000e+00> : vector<8x128xf32>
    %11 = tpu.matmul %10, %2, %cst_9 {dimension_numbers = #tpu.dot_dimension_numbers<[1], [0], [0], [1], [0, 0, 1, 1], [], []>, precision = #tpu.contract_precision<fp32>} : vector<8x128xf32>, vector<128x128xf32>, vector<8x128xf32> -> vector<8x128xf32>
    %12 = vector.broadcast %4 : vector<1x128xf32> to vector<8x128xf32>
    %13 = arith.addf %11, %12 : vector<8x128xf32>
    %14 = math.tanh %13 : vector<8x128xf32>
    %15 = vector.extract_strided_slice %14 {offsets = [0, 0], sizes = [8, 64], strides = [1, 1]} : vector<8x128xf32> to vector<8x64xf32>
    %c0_10 = arith.constant 0 : index
    %c0_11 = arith.constant 0 : index
    %16 = vector.load %arg4[%c0_10, %c0_11] : memref<8x64xf32, #tpu.memory_space<vmem>>, vector<8x64xf32>
    tpu.vector_store %arg4[%c0_10, %c0_11], %15 {strides = array<i32>} : memref<8x64xf32, #tpu.memory_space<vmem>>, vector<8x64xf32>,
    %17 = vector.broadcast %5 : vector<1x128xf32> to vector<8x128xf32>
    %18 = arith.mulf %14, %17 : vector<8x128xf32>
    %cst_12 = arith.constant dense<0.000000e+00> : vector<8xf32>
    %19 = vector.multi_reduction <add>, %18, %cst_12 [1] : vector<8x128xf32> to vector<8xf32>
    %20 = vector.shape_cast %19 : vector<8xf32> to vector<8x1xf32>
    %21 = vector.broadcast %6 : vector<1x1xf32> to vector<8x1xf32>
    %22 = arith.addf %20, %21 : vector<8x1xf32>
    %c0_13 = arith.constant 0 : index
    %c0_14 = arith.constant 0 : index
    %23 = vector.load %arg3[%c0_13, %c0_14] : memref<8x1xf32, #tpu.memory_space<vmem>>, vector<8x1xf32>
    tpu.vector_store %arg3[%c0_13, %c0_14], %22 {strides = array<i32>} : memref<8x1xf32, #tpu.memory_space<vmem>>, vector<8x1xf32>,
    return
  }
}

</mosaic_0001>

<bundles_post_ra>
// kernel: tpu_custom_call.1
= control target key start
LH: loop header
LB: loop body
LE: loop exit
PB: predicated region body
PF: predicated region fallthrough
CT: control target
= control target key end

     0   :  { %10 = vsyncpa [#allocation3], 0  ;;  %s1087_s0 = inlined_call_operand.hbm [shape: f32[8,32], index: 0, kind: input, shape index: {}]   ;;  %s1088_s1 = inlined_call_operand.hbm [shape: f32[160,128], index: 1, kind: input, shape index: {}]   ;;  %s1089_s2 = inlined_call_operand.hbm [shape: f32[8,128], index: 2, kind: input, shape index: {}]   ;;  %s1090_s3 = inlined_call_operand.vmem [shape: f32[8,1], index: 3, kind: output, shape index: {0}]   ;;  %s1091_s4 = inlined_call_operand.hbm [shape: f32[8,64], index: 4, kind: output, shape index: {1}]  }
   0x1   :  { %11 = vsyncpa [#allocation6], 0  ;;  %s28_s17 = sshll.u32 %s1088_s1, 4  ;;  %s29_s17 = int_to_ptr.hbm [resolvable:$true] %s28_s17 }
   0x2   :  { %12 = vsyncpa [#allocation4], 0  ;;  %s767_s18 = smov [#allocation5]   ;;  %s18_s22 = sshll.u32 %s1087_s0, 4  ;;  %s19_s22 = int_to_ptr.hbm [resolvable:$true] %s18_s22 }
   0x3   :  { %s30_s19 = sshll.u32 %s767_s18, 4  ;;  %s768_s23 = smov 128   ;;  %s31_s19 = int_to_ptr.vmem [resolvable:$true] %s30_s19 }
   0x4   :  { %s769_s24 = smov 8   ;;  %s770_s25 = smov [#allocation2]  }
   0x5   :  { %36 = dma.hbm_to_vmem [thread:$0]  %s29_s17, 2560, %s31_s19, [#allocation6], %s768_s23, %s768_s23, %s769_s24  }
   0x6   :  { %s20_s26 = sshll.u32 %s770_s25, 4  ;;  %s42_s29 = sshll.u32 %s1089_s2, 4  ;;  %s21_s26 = int_to_ptr.vmem [resolvable:$true] %s20_s26  ;;  %s43_s29 = int_to_ptr.hbm [resolvable:$true] %s42_s29 }
   0x7   :  { %23 = dma.hbm_to_vmem [thread:$0]  %s19_s22, 128, %s21_s26, [#allocation3]  }
   0x8   :  { %s771_s1 = smov [#allocation7]  }
   0x9   :  { %s44_s30 = sshll.u32 %s771_s1, 4  ;;  %s45_s30 = int_to_ptr.vmem [resolvable:$true] %s44_s30 }
   0xa   :  { %47 = dma.hbm_to_vmem [thread:$0]  %s43_s29, 128, %s45_s30, [#allocation6]  }
   0xb   :  { %761 = dma.done.wait [#allocation3], 128  }
   0xc   :  { %762 = vsyncadd [#allocation3], 4294967168 }
   0xd   :  { %763 = dma.done.wait [#allocation6], 2688  }
   0xe   :  { %764 = vsyncadd [#allocation6], 4294964608  ;;  %vm86_vm0 = vcmask 261120   ;;  %v64_v0 = vld [vmem:[#allocation5 + $0x18] sm:$0xff]  ;;  %v63_v1 = vld [vmem:[#allocation5 + $0x10] sm:$0xff]  ;;  %s772_s0 = smov [#allocation8]  }
   0xf   :  { %v62_v2 = vld [vmem:[#allocation5 + $0x8] sm:$0xff]  ;;  %v807_v3 = vand.u32 4294901760, %v64_v0  ;;  %v809_v4 = vand.u32 4294901760, %v63_v1  ;;  %v61_v6 = vld [vmem:[#allocation5] sm:$0xff]  ;;  %v60_v7 = vld [vmem:[#allocation2] sm:$0xff]  ;;  %s636_s2 = sshll.u32 %s772_s0, 4  ;;  %s637_s2 = int_to_ptr.vmem [resolvable:$true] %s636_s2 }
  0x10   :  { %v811_v5 = vand.u32 4294901760, %v62_v2  ;;  %v813_v8 = vand.u32 4294901760, %v61_v6  ;;  %v88_v9 = vsel %vm86_vm0, %v60_v7, 0  ;;  %v80_v10 = vld [vmem:[#allocation5 + $0x98] sm:$0xff]  ;;  %v79_v11 = vld [vmem:[#allocation5 + $0x90] sm:$0xff]  ;;  %v78_v12 = vld [vmem:[#allocation5 + $0x88] sm:$0xff] }
  0x11   :  { %103 = vmatpush.msra.mxu0 %v807_v3  ;;  %v817_v13 = vsub.f32 %v64_v0, %v807_v3  ;;  %v819_v14 = vand.u32 4294901760, %v88_v9  ;;  %v822_v15 = vsub.f32 %v63_v1, %v809_v4  ;;  %v830_v18 = vand.u32 4294901760, %v80_v10  ;;  %v77_v37 = vld [vmem:[#allocation5 + $0x80] sm:$0xff]  ;;  %v76_v38 = vld [vmem:[#allocation5 + $0x78] sm:$0xff]  ;;  %v75_v39 = vld [vmem:[#allocation5 + $0x70] sm:$0xff]  ;;  %s638_s7 = sshll.u32 %s1091_s4, 4  ;;  %s639_s7 = int_to_ptr.hbm [resolvable:$true] %s638_s7 }
  0x12   :  { %v825_v16 = vsub.f32 %v62_v2, %v811_v5  ;;  %v828_v17 = vsub.f32 %v61_v6, %v813_v8  ;;  %v832_v19 = vand.u32 4294901760, %v79_v11  ;;  %v834_v20 = vand.u32 4294901760, %v78_v12  ;;  %v74_v43 = vld [vmem:[#allocation5 + $0x68] sm:$0xff]  ;;  %v73_v48 = vld [vmem:[#allocation5 + $0x60] sm:$0xff]  ;;  %v72_v53 = vld [vmem:[#allocation5 + $0x58] sm:$0xff] }
  0x13   :  { %105 = vmatpush.msra.mxu0 %v809_v4  ;;  %v133_v21 = vand.u32 4294901760, %v817_v13  ;;  %v839_v22 = vsub.f32 %v88_v9, %v819_v14  ;;  %v139_v23 = vand.u32 4294901760, %v822_v15  ;;  %v845_v26 = vsub.f32 %v80_v10, %v830_v18  ;;  %278 = vmatpush.msra.mxu2 %v830_v18  ;;  %v71_v54 = vld [vmem:[#allocation5 + $0x50] sm:$0xff] }
  0x14   :  { %v145_v24 = vand.u32 4294901760, %v825_v16  ;;  %v151_v25 = vand.u32 4294901760, %v828_v17  ;;  %v848_v27 = vsub.f32 %v79_v11, %v832_v19  ;;  %v851_v28 = vsub.f32 %v78_v12, %v834_v20 }
  0x15   :  { %107 = vmatpush.msra.mxu0 %v811_v5  ;;  %v134_v29 = vsub.f32 %v817_v13, %v133_v21  ;;  %v112_v30 = vand.u32 4294901760, %v839_v22  ;;  %v140_v31 = vsub.f32 %v822_v15, %v139_v23  ;;  %v320_v34 = vand.u32 4294901760, %v845_v26  ;;  %280 = vmatpush.msra.mxu2 %v832_v19 }
  0x16   :  { %v146_v32 = vsub.f32 %v825_v16, %v145_v24  ;;  %v152_v33 = vsub.f32 %v828_v17, %v151_v25  ;;  %v326_v35 = vand.u32 4294901760, %v848_v27  ;;  %v332_v36 = vand.u32 4294901760, %v851_v28 }
  0x17   :  { %109 = vmatpush.msra.mxu0 %v813_v8  ;;  %v135_v40 = vand.u32 4294901760, %v134_v29  ;;  %v113_v41 = vsub.f32 %v839_v22, %v112_v30  ;;  %v141_v42 = vand.u32 4294901760, %v140_v31  ;;  %v321_v45 = vsub.f32 %v845_v26, %v320_v34  ;;  %282 = vmatpush.msra.mxu2 %v834_v20 }
  0x18   :  { %v147_v44 = vand.u32 4294901760, %v146_v32  ;;  %v327_v46 = vsub.f32 %v848_v27, %v326_v35  ;;  %v333_v47 = vsub.f32 %v851_v28, %v332_v36  ;;  %v887_v50 = vand.u32 4294901760, %v77_v37 }
  0x19   :  { %174 = vmatpush.msrb.mxu0 %v817_v13  ;;  %136 = vmatpush.msra.mxu1 %v135_v40  ;;  %v114_v49 = vand.u32 4294901760, %v113_v41  ;;  %v889_v51 = vand.u32 4294901760, %v76_v38  ;;  %v891_v52 = vand.u32 4294901760, %v75_v39  ;;  %v153_v55 = vand.u32 4294901760, %v152_v33 }
  0x1a   :  { %v322_v56 = vand.u32 4294901760, %v321_v45  ;;  %v328_v57 = vand.u32 4294901760, %v327_v46  ;;  %v894_v58 = vand.u32 4294901760, %v74_v43  ;;  %v897_v59 = vsub.f32 %v77_v37, %v887_v50  ;;  %284 = vmatpush.msra.mxu2 %v887_v50  ;;  %v67_v45 = vld [vmem:[#allocation5 + $0x30] sm:$0xff] }
  0x1b   :  { %177 = vmatpush.msrb.mxu0 %v822_v15  ;;  %142 = vmatpush.msra.mxu1 %v141_v42  ;;  %v900_v60 = vsub.f32 %v76_v38, %v889_v51  ;;  %v903_v61 = vsub.f32 %v75_v39, %v891_v52  ;;  %v905_v62 = vand.u32 4294901760, %v73_v48  ;;  %v334_v63 = vand.u32 4294901760, %v333_v47 }
  0x1c   :  { %115 = vmatmul.f32.vlgmr.msra.gmra.mxu0 %v114_v49  ;;  %323 = vmatpush.msra.mxu3 %v322_v56  ;;  %v909_v0 = vsub.f32 %v74_v43, %v894_v58  ;;  %v911_v1 = vand.u32 4294901760, %v72_v53  ;;  %v913_v2 = vand.u32 4294901760, %v71_v54  ;;  %v338_v6 = vand.u32 4294901760, %v897_v59 }
  0x1d   :  { %180 = vmatpush.msrb.mxu0 %v825_v16  ;;  %148 = vmatpush.msra.mxu1 %v147_v44  ;;  %v344_v7 = vand.u32 4294901760, %v900_v60  ;;  %v350_v9 = vand.u32 4294901760, %v903_v61  ;;  %v920_v10 = vsub.f32 %v73_v48, %v905_v62  ;;  %v1027_v49 = vand.u32 4294901760, %v67_v45 }
  0x1e   :  { %329 = vmatpush.msra.mxu3 %v328_v57  ;;  %v356_v11 = vand.u32 4294901760, %v909_v0  ;;  %v925_v12 = vsub.f32 %v72_v53, %v911_v1  ;;  %v339_v29 = vsub.f32 %v897_v59, %v338_v6  ;;  %v941_v13 = vsub.f32 %v71_v54, %v913_v2  ;;  %286 = vmatpush.msra.mxu2 %v889_v51  ;;  %v66_v53 = vld [vmem:[#allocation5 + $0x28] sm:$0xff] }
  0x1f   :  { %183 = vmatpush.msrb.mxu0 %v828_v17  ;;  %154 = vmatpush.msra.mxu1 %v153_v55  ;;  %v345_v31 = vsub.f32 %v900_v60, %v344_v7  ;;  %v351_v32 = vsub.f32 %v903_v61, %v350_v9  ;;  %v362_v33 = vand.u32 4294901760, %v920_v10  ;;  %v397_v57 = vsub.f32 %v67_v45, %v1027_v49 }
  0x20   :  { %156 = vmatmul.f32.vlgmr.msra.gmra.mxu1 %v819_v14  ;;  %335 = vmatpush.msra.mxu3 %v334_v63  ;;  %v357_v38 = vsub.f32 %v909_v0, %v356_v11  ;;  %v368_v39 = vand.u32 4294901760, %v925_v12  ;;  %v374_v40 = vand.u32 4294901760, %v941_v13  ;;  %v1037_v63 = vand.u32 4294901760, %v66_v53 }
  0x21   :  { %232 = vmatpush.msra.mxu0 %v133_v21  ;;  %203 = vmatpush.msrb.mxu1 %v807_v3  ;;  %v340_v21 = vand.u32 4294901760, %v339_v29  ;;  %v346_v37 = vand.u32 4294901760, %v345_v31  ;;  %v352_v15 = vand.u32 4294901760, %v351_v32  ;;  %v65_v29 = vld [vmem:[#allocation5 + $0x20] sm:$0xff]  ;;  %vm619_vm1 = vcmask 523264  }
  0x22   :  { %288 = vmatpush.msra.mxu2 %v891_v52  ;;  %v358_v41 = vand.u32 4294901760, %v357_v38  ;;  %v369_v16 = vsub.f32 %v925_v12, %v368_v39  ;;  %v375_v17 = vsub.f32 %v941_v13, %v374_v40  ;;  %v403_v38 = vsub.f32 %v66_v53, %v1037_v63 }
  0x23   :  { %236 = vmatpush.msra.mxu0 %v139_v23  ;;  %205 = vmatpush.msrb.mxu1 %v809_v4  ;;  %v363_v23 = vsub.f32 %v920_v10, %v362_v33  ;;  %vm627_vm2 = vcmask 7168  }
  0x24   :  { %186 = vmatmul.f32.vlgmr.msrb.gmra.mxu0 %v839_v22  ;;  %341 = vmatpush.msra.mxu3 %v340_v21  ;;  %v376_v22 = vand.u32 4294901760, %v375_v17  ;;  %v398_v21 = vand.u32 4294901760, %v397_v57 }
  0x25   :  { %240 = vmatpush.msra.mxu0 %v145_v24  ;;  %207 = vmatpush.msrb.mxu1 %v811_v5  ;;  %v364_v24 = vand.u32 4294901760, %v363_v23 }
  0x26   :  { %347 = vmatpush.msra.mxu3 %v346_v37  ;;  %290 = vmatpush.msra.mxu2 %v894_v58  ;;  %v307_v37 = vand.u32 4294901760, %v65_v29  ;;  %v399_v23 = vsub.f32 %v397_v57, %v398_v21 }
  0x27   :  { %244 = vmatpush.msra.mxu0 %v151_v25  ;;  %209 = vmatpush.msrb.mxu1 %v813_v8  ;;  %v370_v25 = vand.u32 4294901760, %v369_v16  ;;  %v404_v16 = vand.u32 4294901760, %v403_v38 }
  0x28   :  { %213 = vmatmul.f32.vlgmr.msrb.gmra.mxu1 %v112_v30  ;;  %353 = vmatpush.msra.mxu3 %v352_v15  ;;  %v68_v30 = vld [vmem:[#allocation5 + $0x38] sm:$0xff] }
  0x29   :  { %263 = vmatpush.msra.mxu1 %v807_v3  ;;  %292 = vmatpush.msra.mxu2 %v905_v62  ;;  %v70_v3 = vld [vmem:[#allocation5 + $0x48] sm:$0xff]  ;;  %v1015_v44 = vand.u32 4294901760, %v68_v30 }
  0x2a   :  { %359 = vmatpush.msra.mxu3 %v358_v41  ;;  %421 = vmatpush.msrb.mxu0 %v845_v26  ;;  %v409_v41 = vsub.f32 %v65_v29, %v307_v37 }
  0x2b   :  { %265 = vmatpush.msra.mxu1 %v809_v4  ;;  %294 = vmatpush.msra.mxu2 %v911_v1  ;;  %v1002_v4 = vand.u32 4294901760, %v70_v3  ;;  %v1025_v48 = vsub.f32 %v68_v30, %v1015_v44 }
  0x2c   :  { %246 = vmatmul.f32.vlgmr.msra.gmra.mxu0 %v819_v14  ;;  %365 = vmatpush.msra.mxu3 %v364_v24  ;;  %v400_v24 = vand.u32 4294901760, %v399_v23  ;;  %v410_v17 = vand.u32 4294901760, %v409_v41 }
  0x2d   :  { %267 = vmatpush.msra.mxu1 %v811_v5  ;;  %424 = vmatpush.msrb.mxu0 %v848_v27  ;;  %v69_v5 = vld [vmem:[#allocation5 + $0x40] sm:$0xff]  ;;  %v392_v56 = vand.u32 4294901760, %v1025_v48 }
  0x2e   :  { %371 = vmatpush.msra.mxu3 %v370_v25  ;;  %296 = vmatpush.msra.mxu2 %v913_v2  ;;  %v405_v25 = vsub.f32 %v403_v38, %v404_v16 }
  0x2f   :  { %269 = vmatpush.msra.mxu1 %v813_v8  ;;  %427 = vmatpush.msrb.mxu0 %v851_v28  ;;  %v1005_v8 = vsub.f32 %v70_v3, %v1002_v4  ;;  %v393_v32 = vsub.f32 %v1025_v48, %v392_v56 }
  0x30   :  { %271 = vmatmul.f32.vlgmr.msra.gmra.mxu1 %v819_v14  ;;  %377 = vmatpush.msra.mxu3 %v376_v22  ;;  %v1007_v14 = vand.u32 4294901760, %v69_v5  ;;  %v411_v22 = vsub.f32 %v409_v41, %v410_v17  ;;  %v406_v3 = vand.u32 4294901760, %v405_v25 }
  0x31   :  { %474 = vmatpush.msrb.mxu1 %v830_v18  ;;  %430 = vmatpush.msrb.mxu0 %v897_v59  ;;  %v380_v42 = vand.u32 4294901760, %v1005_v8  ;;  %v394_v15 = vand.u32 4294901760, %v393_v32 }
  0x32   :  { %298 = vmatpush.msra.mxu2 %v1002_v4  ;;  %v1013_v43 = vsub.f32 %v69_v5, %v1007_v14  ;;  %v412_v5 = vand.u32 4294901760, %v411_v22 }
  0x33   :  { %476 = vmatpush.msrb.mxu1 %v832_v19  ;;  %433 = vmatpush.msrb.mxu0 %v900_v60  ;;  %v381_v46 = vsub.f32 %v1005_v8, %v380_v42 }
  0x34   :  { %300 = vmatpush.msra.mxu2 %v1007_v14  ;;  %v386_v47 = vand.u32 4294901760, %v1013_v43 }
  0x35   :  { %478 = vmatpush.msrb.mxu1 %v834_v20  ;;  %436 = vmatpush.msrb.mxu0 %v903_v61  ;;  %v382_v54 = vand.u32 4294901760, %v381_v46 }
  0x36   :  { %302 = vmatpush.msra.mxu2 %v1015_v44  ;;  %v387_v55 = vsub.f32 %v1013_v43, %v386_v47 }
  0x37   :  { %480 = vmatpush.msrb.mxu1 %v887_v50  ;;  %439 = vmatpush.msrb.mxu0 %v909_v0 }
  0x38   :  { %304 = vmatpush.msra.mxu2 %v1027_v49  ;;  %383 = vmatpush.msra.mxu3 %v382_v54  ;;  %v388_v31 = vand.u32 4294901760, %v387_v55 }
  0x39   :  { %482 = vmatpush.msrb.mxu1 %v889_v51  ;;  %442 = vmatpush.msrb.mxu0 %v920_v10 }
  0x3a   :  { %306 = vmatpush.msra.mxu2 %v1037_v63  ;;  %389 = vmatpush.msra.mxu3 %v388_v31 }
  0x3b   :  { %484 = vmatpush.msrb.mxu1 %v891_v52  ;;  %445 = vmatpush.msrb.mxu0 %v925_v12 }
  0x3c   :  { %308 = vmatpush.msra.mxu2 %v307_v37  ;;  %395 = vmatpush.msra.mxu3 %v394_v15 }
  0x3d   :  { %486 = vmatpush.msrb.mxu1 %v894_v58  ;;  %448 = vmatpush.msrb.mxu0 %v941_v13 }
  0x3e   :  { %515 = vmatpush.msrb.mxu2 %v320_v34  ;;  %401 = vmatpush.msra.mxu3 %v400_v24 }
  0x3f   :  { %488 = vmatpush.msrb.mxu1 %v905_v62  ;;  %451 = vmatpush.msrb.mxu0 %v1005_v8 }
  0x40   :  { %519 = vmatpush.msrb.mxu2 %v326_v35  ;;  %407 = vmatpush.msra.mxu3 %v406_v3 }
  0x41   :  { %490 = vmatpush.msrb.mxu1 %v911_v1  ;;  %454 = vmatpush.msrb.mxu0 %v1013_v43  ;;  %v660_v43 = vld [vmem:[#allocation7 + $0x3] ss:$0 sm:$0xff] }
  0x42   :  { %523 = vmatpush.msrb.mxu2 %v332_v36  ;;  %413 = vmatpush.msra.mxu3 %v412_v5 }
  0x43   :  { %492 = vmatpush.msrb.mxu1 %v913_v2  ;;  %457 = vmatpush.msrb.mxu0 %v1025_v48 }
  0x44   :  { %527 = vmatpush.msrb.mxu2 %v338_v6  ;;  %582 = vmatpush.msrb.mxu3 %v830_v18 }
  0x45   :  { %494 = vmatpush.msrb.mxu1 %v1002_v4  ;;  %460 = vmatpush.msrb.mxu0 %v397_v57 }
  0x46   :  { %531 = vmatpush.msrb.mxu2 %v344_v7  ;;  %584 = vmatpush.msrb.mxu3 %v832_v19  ;;  %v657_v19 = vld [vmem:[#allocation7] ss:$0 sm:$0xff] }
  0x47   :  { %496 = vmatpush.msrb.mxu1 %v1007_v14  ;;  %463 = vmatpush.msrb.mxu0 %v403_v38 }
  0x48   :  { %535 = vmatpush.msrb.mxu2 %v350_v9  ;;  %586 = vmatpush.msrb.mxu3 %v834_v20 }
  0x49   :  { %498 = vmatpush.msrb.mxu1 %v1015_v44  ;;  %466 = vmatpush.msrb.mxu0 %v409_v41 }
  0x4a   :  { %539 = vmatpush.msrb.mxu2 %v356_v11  ;;  %588 = vmatpush.msrb.mxu3 %v887_v50 }
  0x4b   :  { %500 = vmatpush.msrb.mxu1 %v1027_v49 }
  0x4c   :  { %543 = vmatpush.msrb.mxu2 %v362_v33  ;;  %590 = vmatpush.msrb.mxu3 %v889_v51 }
  0x4d   :  { %502 = vmatpush.msrb.mxu1 %v1037_v63 }
  0x4e   :  { %547 = vmatpush.msrb.mxu2 %v368_v39  ;;  %592 = vmatpush.msrb.mxu3 %v891_v52 }
  0x4f   :  { %504 = vmatpush.msrb.mxu1 %v307_v37 }
  0x50   :  { %551 = vmatpush.msrb.mxu2 %v374_v40  ;;  %594 = vmatpush.msrb.mxu3 %v894_v58 }
  0x52   :  { %555 = vmatpush.msrb.mxu2 %v380_v42  ;;  %596 = vmatpush.msrb.mxu3 %v905_v62 }
  0x54   :  { %559 = vmatpush.msrb.mxu2 %v386_v47  ;;  %598 = vmatpush.msrb.mxu3 %v911_v1 }
  0x56   :  { %563 = vmatpush.msrb.mxu2 %v392_v56  ;;  %600 = vmatpush.msrb.mxu3 %v913_v2  ;;  %v658_v2 = vld [vmem:[#allocation7 + $0x1] ss:$0 sm:$0xff] }
  0x58   :  { %567 = vmatpush.msrb.mxu2 %v398_v21  ;;  %602 = vmatpush.msrb.mxu3 %v1002_v4 }
  0x5a   :  { %571 = vmatpush.msrb.mxu2 %v404_v16  ;;  %604 = vmatpush.msrb.mxu3 %v1007_v14  ;;  %v659_v14 = vld [vmem:[#allocation7 + $0x2] ss:$0 sm:$0xff] }
  0x5c   :  { %575 = vmatpush.msrb.mxu2 %v410_v17  ;;  %606 = vmatpush.msrb.mxu3 %v1015_v44 }
  0x5e   :  { %608 = vmatpush.msrb.mxu3 %v1027_v49 }
  0x60   :  { %610 = vmatpush.msrb.mxu3 %v1037_v63 }
  0x62   :  { %612 = vmatpush.msrb.mxu3 %v307_v37 }
  0x99   :  { %v116_v18 = vpop.f32.mrf.mxu0 }
  0x9a   :  { %v117_v26 = vadd.f32 %v657_v19, %v116_v18 }
  0x9d   :  { %v157_v20 = vpop.f32.mrf.mxu1 }
  0x9e   :  { %v158_v28 = vadd.f32 %v157_v20, %v117_v26 }
  0xa1   :  { %v187_v27 = vpop.f32.mrf.mxu0 }
  0xa2   :  { %v188_v35 = vadd.f32 %v187_v27, %v158_v28 }
  0xa5   :  { %v214_v34 = vpop.f32.mrf.mxu1 }
  0xa6   :  { %v215_v36 = vadd.f32 %v214_v34, %v188_v35 }
  0xa9   :  { %v247_v50 = vpop.f32.mrf.mxu0 }
  0xaa   :  { %v248_v51 = vadd.f32 %v247_v50, %v215_v36 }
  0xad   :  { %v272_v52 = vpop.f32.mrf.mxu1 }
  0xae   :  { %v273_v58 = vadd.f32 %v272_v52, %v248_v51 }
  0xb0   :  { %661 = vtanh.f32 %v273_v58 }
  0xb6   :  { %v662_v59 = vpop.eup %661 }
  0xb7   :  { %v309_v60 = vand.u32 4294901760, %v662_v59 }
  0xb9   :  { %415 = vmatmul.f32.vlgmr.msra.gmra.mxu3 %v309_v60  ;;  %v310_v61 = vsub.f32 %v662_v59, %v309_v60 }
  0xbb   :  { %469 = vmatmul.f32.vlgmr.msrb.gmra.mxu0 %v310_v61  ;;  %v311_v62 = vand.u32 4294901760, %v310_v61 }
  0xbd   :  { %508 = vmatmul.f32.vlgmr.msrb.gmra.mxu1 %v311_v62  ;;  %v312_v0 = vsub.f32 %v310_v61, %v311_v62 }
  0xbf   :  { %v313_v1 = vand.u32 4294901760, %v312_v0 }
  0xc1   :  { %314 = vmatmul.f32.vlgmr.msra.gmra.mxu2 %v313_v1  ;;  %614 = vmatmul.f32.vlgmr.msrb.gmra.mxu3 %v309_v60 }
  0xc9   :  { %577 = vmatmul.f32.vlgmr.msrb.gmra.mxu2 %v309_v60 }
 0x138   :  { %v470_v11 = vpop.f32.mrf.mxu0 }
 0x13a   :  { %v509_v33 = vpop.f32.mrf.mxu1 }
 0x13c   :  { %v416_v6 = vpop.f32.mrf.mxu3 }
 0x144   :  { %v315_v7 = vpop.f32.mrf.mxu2  ;;  %v615_v4 = vpop.f32.mrf.mxu3 }
 0x145   :  { %v316_v9 = vadd.f32 %v658_v2, %v315_v7 }
 0x147   :  { %v417_v10 = vadd.f32 %v416_v6, %v316_v9 }
 0x149   :  { %v471_v12 = vadd.f32 %v470_v11, %v417_v10 }
 0x14b   :  { %v510_v13 = vadd.f32 %v509_v33, %v471_v12 }
 0x14c   :  { %v578_v39 = vpop.f32.mrf.mxu2 }
 0x14d   :  { %v579_v40 = vadd.f32 %v578_v39, %v510_v13 }
 0x14f   :  { %v616_v8 = vadd.f32 %v615_v4, %v579_v40 }
 0x151   :  { %663 = vtanh.f32 %v616_v8 }
 0x157   :  { %v664_v30 = vpop.eup %663 }
 0x158   :  { %v622_v42 = vmul.f32 %v664_v30, %v659_v14  ;;  %620 = vst.msk [vmem:[#allocation8] sm:$0xff] %vm619_vm1, %v664_v30 }
 0x159   :  { %641 = dma.vmem_to_hbm [thread:$0]  %s637_s2, 128, %s639_s7, [#allocation4]  }
 0x15a   :  { %623 = vadd.xlane.f32.xlu0 %v622_v42 }
 0x1cd   :  { %v624_v44 = vpop.xlane.xlu0 %623 }
 0x1ce   :  { %v626_v45 = vadd.f32 %v660_v43, %v624_v44 }
 0x1d0   :  { %628 = vst.msk [vmem:[%s1090_s3] sm:$0xff] %vm627_vm2, %v626_v45 }
 0x1d1   :  { %765 = dma.done.wait [#allocation4], 128  }
 0x1d2   :  { %766 = vsyncadd [#allocation4], 4294967168 }
 0x1d3   :  { %648 = vsyncpa [#allocation3], 1 }
 0x1d4   :  { %649 = vsyncpa [#allocation6], 1 }
 0x1d5   :  { %650 = vsyncpa [#allocation4], 1 }

</bundles_post_ra>
